<compile_context>
chip_gen: v6e
topology: v6e:2x2x1
jax: 0.10.0
libtpu: 0.0.40
codegen_flags: <defaults>
</compile_context>

<pallas_src>
import jax
import jax.numpy as jnp
from jax.experimental import pallas as pl
from jax.experimental.pallas import tpu as pltpu


def _identity_dma_kernel(obs_hbm_ref, out_hbm_ref, sem):
    # One HBM->HBM DMA: issue and wait.  The TensorCore does no vector work.
    cp = pltpu.make_async_copy(obs_hbm_ref, out_hbm_ref, sem)
    cp.start()
    cp.wait()


def identity_encoder_forward(obs, detach=False, use_kernel=False):
    """Reproduces IdentityEncoder.forward: returns obs unchanged.

    Default path: pure passthrough (no kernel launch, no HBM traffic).
    use_kernel=True: materializes a fresh output buffer via a single
    HBM->HBM DMA Pallas kernel (kept for API/tracing parity & demonstration).
    """
    if detach:
        # Closest JAX analogue of torch .detach() semantics under autodiff.
        obs = jax.lax.stop_gradient(obs)

    if not use_kernel:
        # Best optimization for an identity: do not run a kernel at all.
        return obs

    return pl.pallas_call(
        _identity_dma_kernel,
        out_shape=jax.ShapeDtypeStruct(obs.shape, obs.dtype),
        in_specs=[pl.BlockSpec(memory_space=pl.ANY)],   # raw HBM ref, no auto-DMA
        out_specs=pl.BlockSpec(memory_space=pl.ANY),    # raw HBM ref, no auto-DMA
        scratch_shapes=[pltpu.SemaphoreType.DMA],       # DMA completion semaphore
    )(obs)


class IdentityEncoder:
    """JAX/Pallas port of the PyTorch IdentityEncoder module."""

    def __init__(self, obs_shape, feature_dim, num_layers, num_filters):
        assert len(obs_shape) == 1
        # Module ignores feature_dim/num_layers/num_filters and has no params.
        self.feature_dim = obs_shape[0]

    def __call__(self, obs, detach=False, use_kernel=False):
        return identity_encoder_forward(obs, detach=detach, use_kernel=use_kernel)

    def copy_conv_weights_from(self, source):
        pass

    def log(self, L, step, log_freq):
        pass


if __name__ == "__main__":
    key = jax.random.PRNGKey(0)
    batch, feature_dim = 8, 32
    obs = jax.random.normal(key, (batch, feature_dim), dtype=jnp.float32)

    enc = IdentityEncoder(obs_shape=(feature_dim,), feature_dim=feature_dim,
                          num_layers=2, num_filters=32)

    # Fast (default) path: pure passthrough — no kernel launched.
    out_fast = jax.block_until_ready(enc(obs))
    assert out_fast.shape == obs.shape and out_fast.dtype == obs.dtype
    assert bool(jnp.all(out_fast == obs))

    # Kernel path: single HBM->HBM DMA copy, validated bit-exact.
    out_kernel = jax.block_until_ready(enc(obs, use_kernel=True))
    assert out_kernel.shape == obs.shape and out_kernel.dtype == obs.dtype
    assert bool(jnp.all(out_kernel == obs))

    print("KERNEL_OK")
</pallas_src>

<mosaic_0001>
module attributes {stable_mosaic.version = 11 : i64} {
  func.func @_identity_dma_kernel(%arg0: memref<8x32xf32, #tpu.memory_space<any>>, %arg1: memref<8x32xf32, #tpu.memory_space<any>>, %arg2: memref<!tpu.dma_semaphore, #tpu.memory_space<semaphore_mem>>) attributes {dimension_semantics = [], scalar_prefetch = 0 : i64, scratch_operands = 1 : i64, tpu.core_type = #tpu.core_type<tc>} {
    tpu.enqueue_dma source(%arg0 : memref<8x32xf32, #tpu.memory_space<any>>) target(%arg1 : memref<8x32xf32, #tpu.memory_space<any>>) target_semaphore(%arg2 : memref<!tpu.dma_semaphore, #tpu.memory_space<semaphore_mem>>)
    tpu.wait_dma2 semaphore(%arg2 : memref<!tpu.dma_semaphore, #tpu.memory_space<semaphore_mem>>) src(%arg0 : memref<8x32xf32, #tpu.memory_space<any>>) dst(%arg1 : memref<8x32xf32, #tpu.memory_space<any>>)
    return
  }
}

</mosaic_0001>

<bundles_post_ra>
// kernel: tpu_custom_call.1
= control target key start
LH: loop header
LB: loop body
LE: loop exit
PB: predicated region body
PF: predicated region fallthrough
CT: control target
= control target key end

     0   :  { %s28_s6 = smov [#allocation2]   ;;  %s29_s7 = smov 131072   ;;  %s47_s0 = inlined_call_operand.hbm [shape: f32[8,32], index: 0, kind: input, shape index: {}]   ;;  %s48_s1 = inlined_call_operand.hbm [shape: f32[8,32], index: 1, kind: output, shape index: {}]  }
   0x1   :  { %s30_s8 = smov 0  }
   0x2   :  { %12 = dma.general %s47_s0, 128, %s48_s1, %s28_s6, %s29_s7, [#allocation4], %s30_s8, 0  }
   0x3   :  { %26 = dma.done.wait [#allocation2], 128 }
   0x4   :  { %27 = vsyncadd [#allocation2], 4294967168 }
   0x5   :  { %16 = vsyncmov [#allocation2] }
   0x8   :  { %s17_s13 = vpop.sfrf %16 }
   0x9   :  { %p22_p0 = scmp.ne.s32.totalorder %s17_s13, 0 }
   0xb   :  { %21 = shalt.err (%p22_p0)  }

</bundles_post_ra>
